<compile_context>
chip_gen: v7x
topology: tpu7x:2x2x1
jax: 0.10.0
libtpu: 0.0.40
codegen_flags: <defaults>
</compile_context>

<pallas_src>
import math

import jax
import jax.numpy as jnp
from jax.experimental import pallas as pl
from jax.experimental.pallas import tpu as pltpu


def _round_up(x, m):
    return (x + m - 1) // m * m


def _sublane_multiple(dtype):
    # Native vreg tile is (8, 128) 32-bit words; sub-32-bit dtypes pack along sublanes.
    return max(8, 32 // jnp.dtype(dtype).itemsize)


_VMEM_BUDGET = 30 * 1024 * 1024   # double-buffered working-set target
_VMEM_LIMIT = 40 * 1024 * 1024    # explicit scoped-VMEM limit (< v7x 64 MiB physical)


def _make_single_k_kernel(scale):
    # x_ref: (tm, tk), w_ref: (tn, tk)  [weight kept in (out_dim, in_dim) layout],
    # b_ref: (1, tn) f32 (already * lr_mul), o_ref: (tm, tn)
    def kernel(x_ref, w_ref, b_ref, o_ref):
        acc = jax.lax.dot_general(
            x_ref[...], w_ref[...],
            dimension_numbers=(((1,), (1,)), ((), ())),   # x @ w.T on the MXU
            preferred_element_type=jnp.float32,
        )
        o_ref[...] = (acc * scale + b_ref[...]).astype(o_ref.dtype)

    return kernel


def _make_multi_k_kernel(scale):
    def kernel(x_ref, w_ref, b_ref, o_ref, acc_ref):
        @pl.when(pl.program_id(2) == 0)
        def _init():
            acc_ref[...] = jnp.zeros_like(acc_ref)

        acc_ref[...] += jax.lax.dot_general(
            x_ref[...], w_ref[...],
            dimension_numbers=(((1,), (1,)), ((), ())),
            preferred_element_type=jnp.float32,
        )

        @pl.when(pl.program_id(2) == pl.num_programs(2) - 1)
        def _finalize():
            o_ref[...] = (acc_ref[...] * scale + b_ref[...]).astype(o_ref.dtype)

    return kernel


def equal_linear_pallas(x, weight, bias=None, *, lr_mul=1.0,
                        max_tm=512, max_tk=2048, max_tn=1024):
    """EqualLinear forward.

    x:      (..., in_dim)
    weight: (out_dim, in_dim)  (stored pre-divided by lr_mul, as in the PyTorch module)
    bias:   (out_dim,) or None
    """
    out_dim, in_dim = weight.shape
    lead = x.shape[:-1]
    assert x.shape[-1] == in_dim
    out_dtype = x.dtype

    x2 = x.reshape(-1, in_dim)
    B = x2.shape[0]
    if B == 0:
        return jnp.zeros((*lead, out_dim), out_dtype)

    scale = lr_mul / math.sqrt(in_dim)
    sub = _sublane_multiple(x.dtype)
    in_isz = jnp.dtype(x.dtype).itemsize
    out_isz = jnp.dtype(out_dtype).itemsize

    # ---------------- tile selection ----------------
    # M: dtype-aware sublane rounding, minimal padding.
    Bs = _round_up(B, sub)
    if Bs <= max_tm:
        tm = Bs
    else:
        cands = [t for t in (512, 256, 128, 64) if t <= max_tm and t % sub == 0]
        cands = cands or [max(sub, _round_up(min(max_tm, 512), sub))]
        tm = min(cands, key=lambda t: (_round_up(B, t), -t))
    Mp = _round_up(B, tm)

    # K: take the whole (lane-rounded) contraction dim when it fits -> single K block.
    K128 = _round_up(in_dim, 128)
    if K128 <= max_tk:
        tk = K128
    else:
        cands = [t for t in (2048, 1024, 512, 256) if t <= max_tk] or [128]
        tk = min(cands, key=lambda t: (_round_up(in_dim, t), -t))
    Kp = _round_up(in_dim, tk)

    # N: lane-dense, 256-multiples preferred when tiling (v6e/v7x 256x256 MXU).
    N128 = _round_up(out_dim, 128)
    if N128 <= max_tn:
        tn = N128
    else:
        cands = [t for t in (1024, 512, 256) if t <= max_tn] or [128]
        tn = min(cands, key=lambda t: (_round_up(out_dim, t), -t))
    Np = _round_up(out_dim, tn)

    # Shrink tiles until the double-buffered working set fits the VMEM budget.
    def _vmem_bytes():
        multi = Kp // tk > 1
        return (2 * tm * tk * in_isz          # x (double-buffered)
                + 2 * tn * tk * in_isz        # weight
                + 2 * 8 * tn * 4              # bias (sublane-padded)
                + 2 * tm * tn * out_isz       # output
                + (tm * tn * 4 if multi else 0))  # f32 accumulator scratch

    while _vmem_bytes() > _VMEM_BUDGET:
        if tn > 256:
            tn = max(128, _round_up(tn // 2, 128)); Np = _round_up(out_dim, tn)
        elif tk > 256:
            tk = max(128, _round_up(tk // 2, 128)); Kp = _round_up(in_dim, tk)
        elif tm > sub:
            tm = max(sub, _round_up(tm // 2, sub)); Mp = _round_up(B, tm)
        else:
            break

    # v7x megacore: guarantee >= 2 blocks on a "parallel" axis when the grid would
    # otherwise collapse to a single block (harmless on single-TC v5e/v6e).
    if Mp // tm == 1 and Np // tn == 1 and Np >= 512 and Np % 256 == 0:
        tn = Np // 2

    # ---------------- operand prep (no transpose pass; pad only if needed) ----------
    xp = x2
    if (Mp, Kp) != (B, in_dim):
        xp = jnp.pad(x2, ((0, Mp - B), (0, Kp - in_dim)))

    w = weight if weight.dtype == x.dtype else weight.astype(x.dtype)
    if (Np, Kp) != (out_dim, in_dim):
        w = jnp.pad(w, ((0, Np - out_dim), (0, Kp - in_dim)))

    if bias is None:
        bp = jnp.zeros((1, Np), jnp.float32)
    else:
        bp = (bias.astype(jnp.float32) * lr_mul).reshape(1, out_dim)
        if Np != out_dim:
            bp = jnp.pad(bp, ((0, 0), (0, Np - out_dim)))

    # ---------------- pallas_call ----------------
    nk = Kp // tk
    if nk == 1:
        grid = (Mp // tm, Np // tn)
        in_specs = [
            pl.BlockSpec((tm, tk), lambda i, j: (i, 0)),
            pl.BlockSpec((tn, tk), lambda i, j: (j, 0)),
            pl.BlockSpec((1, tn), lambda i, j: (0, j)),
        ]
        out_spec = pl.BlockSpec((tm, tn), lambda i, j: (i, j))
        kernel = _make_single_k_kernel(scale)
        scratch = []
        dims = ("parallel", "parallel")
    else:
        grid = (Mp // tm, Np // tn, nk)
        in_specs = [
            pl.BlockSpec((tm, tk), lambda i, j, k: (i, k)),
            pl.BlockSpec((tn, tk), lambda i, j, k: (j, k)),
            pl.BlockSpec((1, tn), lambda i, j, k: (0, j)),
        ]
        out_spec = pl.BlockSpec((tm, tn), lambda i, j, k: (i, j))
        kernel = _make_multi_k_kernel(scale)
        scratch = [pltpu.VMEM((tm, tn), jnp.float32)]
        dims = ("parallel", "parallel", "arbitrary")

    out = pl.pallas_call(
        kernel,
        out_shape=jax.ShapeDtypeStruct((Mp, Np), out_dtype),
        grid_spec=pltpu.PrefetchScalarGridSpec(
            num_scalar_prefetch=0,
            grid=grid,
            in_specs=in_specs,
            out_specs=out_spec,
            scratch_shapes=scratch,
        ),
        compiler_params=pltpu.CompilerParams(
            dimension_semantics=dims,
            vmem_limit_bytes=_VMEM_LIMIT,
        ),
    )(xp, w, bp)

    out = out[:B, :out_dim]
    return out.reshape(*lead, out_dim)


def _reference(x, weight, bias, lr_mul=1.0):
    """Pure-JAX (f32) reference mirroring the PyTorch forward."""
    in_dim = weight.shape[1]
    scale = 1.0 / math.sqrt(in_dim) * lr_mul
    out = jnp.asarray(x, jnp.float32) @ (jnp.asarray(weight, jnp.float32) * scale).T
    if bias is not None:
        out = out + jnp.asarray(bias, jnp.float32) * lr_mul
    return out


if __name__ == "__main__":
    key = jax.random.PRNGKey(0)
    k1, k2, k3, k4, k5, k6, k7 = jax.random.split(key, 7)

    # --- 1) small case matching the module (batch=2, hidden=32), f32, single-K ------
    batch, in_dim, out_dim = 2, 32, 16
    w1 = jax.random.normal(k1, (out_dim, in_dim), jnp.float32)
    b1 = jnp.zeros((out_dim,), jnp.float32)              # bias_init = 0 (default)
    x1 = jax.random.normal(k2, (batch, in_dim), jnp.float32)

    out1 = jax.block_until_ready(equal_linear_pallas(x1, w1, b1, lr_mul=1.0))
    ref1 = _reference(x1, w1, b1, 1.0)
    assert out1.shape == (batch, out_dim)
    assert jnp.allclose(out1, ref1, atol=1e-4, rtol=1e-4)

    # --- 2) padding + multi-block M/N/K accumulation path, lr_mul != 1 --------------
    lr_mul2 = 0.01
    B2, d_in2, d_out2 = 70, 384, 200
    w2 = jax.random.normal(k3, (d_out2, d_in2), jnp.float32) / lr_mul2
    b2 = jnp.full((d_out2,), 1.0, jnp.float32)            # bias_init = 1 (modulation use)
    x2 = jax.random.normal(k4, (B2, d_in2), jnp.float32)

    out2 = jax.block_until_ready(
        equal_linear_pallas(x2, w2, b2, lr_mul=lr_mul2,
                            max_tm=64, max_tk=128, max_tn=128))
    ref2 = _reference(x2, w2, b2, lr_mul2)
    assert out2.shape == (B2, d_out2)
    assert jnp.allclose(out2, ref2, atol=2e-3, rtol=2e-3)

    # --- 3) bf16 activations (16-sublane M tiles, f32 weight cast to bf16 for MXU) --
    B3, d_in3, d_out3 = 10, 512, 256
    w3 = jax.random.normal(k5, (d_out3, d_in3), jnp.float32)
    b3 = 0.1 * jax.random.normal(k6, (d_out3,), jnp.float32)
    x3 = jax.random.normal(k7, (B3, d_in3), jnp.bfloat16)

    out3 = jax.block_until_ready(equal_linear_pallas(x3, w3, b3, lr_mul=1.0))
    ref3 = _reference(x3.astype(jnp.float32),
                      w3.astype(jnp.bfloat16).astype(jnp.float32), b3, 1.0)
    assert out3.shape == (B3, d_out3) and out3.dtype == jnp.bfloat16
    assert jnp.allclose(out3.astype(jnp.float32), ref3, atol=3e-2, rtol=3e-2)

    print("KERNEL_OK")
</pallas_src>

<mosaic_0001>
module attributes {stable_mosaic.version = 11 : i64} {
  func.func @kernel(%arg0: i32, %arg1: i32, %arg2: memref<8x128xf32, #tpu.memory_space<vmem>>, %arg3: memref<128x128xf32, #tpu.memory_space<vmem>>, %arg4: memref<1x128xf32, #tpu.memory_space<vmem>>, %arg5: memref<8x128xf32, #tpu.memory_space<vmem>>) attributes {dimension_semantics = [#tpu.dimension_semantics<parallel>, #tpu.dimension_semantics<parallel>], iteration_bounds = array<i64: 1, 1>, scalar_prefetch = 0 : i64, scratch_operands = 0 : i64, tpu.core_type = #tpu.core_type<tc>, window_params = [{transform_indices = @transform_0, window_bounds = array<i64: 8, 128>}, {transform_indices = @transform_1, window_bounds = array<i64: 128, 128>}, {transform_indices = @transform_2, window_bounds = array<i64: 1, 128>}, {transform_indices = @transform_3, window_bounds = array<i64: 8, 128>}]} {
    %c0 = arith.constant 0 : index
    %c0_0 = arith.constant 0 : index
    %0 = vector.load %arg2[%c0, %c0_0] : memref<8x128xf32, #tpu.memory_space<vmem>>, vector<8x128xf32>
    %c0_1 = arith.constant 0 : index
    %c0_2 = arith.constant 0 : index
    %1 = vector.load %arg3[%c0_1, %c0_2] : memref<128x128xf32, #tpu.memory_space<vmem>>, vector<128x128xf32>
    %cst = arith.constant dense<0.000000e+00> : vector<8x128xf32>
    %2 = tpu.matmul %0, %1, %cst {dimension_numbers = #tpu.dot_dimension_numbers<[1], [1], [0], [0], [0, 0, 1, 0], [], []>} : vector<8x128xf32>, vector<128x128xf32>, vector<8x128xf32> -> vector<8x128xf32>
    %cst_3 = arith.constant 0.176776692 : f32
    %3 = vector.broadcast %cst_3 : f32 to vector<8x128xf32>
    %4 = arith.mulf %2, %3 : vector<8x128xf32>
    %c0_4 = arith.constant 0 : index
    %c0_5 = arith.constant 0 : index
    %5 = vector.load %arg4[%c0_4, %c0_5] : memref<1x128xf32, #tpu.memory_space<vmem>>, vector<1x128xf32>
    %6 = vector.broadcast %5 : vector<1x128xf32> to vector<8x128xf32>
    %7 = arith.addf %4, %6 : vector<8x128xf32>
    %c0_6 = arith.constant 0 : index
    %c0_7 = arith.constant 0 : index
    %8 = vector.load %arg5[%c0_6, %c0_7] : memref<8x128xf32, #tpu.memory_space<vmem>>, vector<8x128xf32>
    tpu.vector_store %arg5[%c0_6, %c0_7], %7 {strides = array<i32>} : memref<8x128xf32, #tpu.memory_space<vmem>>, vector<8x128xf32>,
    return
  }
  func.func @transform_0(%arg0: i32, %arg1: i32) -> (i32, i32) {
    %c0_i32 = arith.constant 0 : i32
    %c0_i32_0 = arith.constant 0 : i32
    return %arg0, %c0_i32 : i32, i32
  }
  func.func @transform_1(%arg0: i32, %arg1: i32) -> (i32, i32) {
    %c0_i32 = arith.constant 0 : i32
    %c0_i32_0 = arith.constant 0 : i32
    return %arg1, %c0_i32 : i32, i32
  }
  func.func @transform_2(%arg0: i32, %arg1: i32) -> (i32, i32) {
    %c0_i32 = arith.constant 0 : i32
    %c0_i32_0 = arith.constant 0 : i32
    return %c0_i32, %arg1 : i32, i32
  }
  func.func @transform_3(%arg0: i32, %arg1: i32) -> (i32, i32) {
    %c0_i32 = arith.constant 0 : i32
    return %arg0, %arg1 : i32, i32
  }
}

</mosaic_0001>

<bundles_post_ra>
// kernel: tpu_custom_call.1
= control target key start
LH: loop header
LB: loop body
LE: loop exit
PB: predicated region body
PF: predicated region fallthrough
CT: control target
= control target key end

     0   :  { %8 = vsyncpa [#allocation3], 0  ;;  %s385_s0 = inlined_call_operand.hbm [shape: f32[8,128], index: 0, kind: input, shape index: {}]   ;;  %s386_s1 = inlined_call_operand.hbm [shape: f32[128,128], index: 1, kind: input, shape index: {}]   ;;  %s387_s2 = inlined_call_operand.vmem [shape: f32[1,128], index: 2, kind: input, shape index: {}]   ;;  %s388_s3 = inlined_call_operand.hbm [shape: f32[8,128], index: 3, kind: output, shape index: {}]  }
   0x1   :  { %9 = vsyncpa [#allocation6], 0 }
   0x2   :  { %10 = vsyncpa [#allocation4], 0  ;;  %s311_s12 = smov [#allocation2]   ;;  %s312_s14 = smov [#allocation5]  }
   0x3   :  { %s17_s13 = sshll.u32 %s311_s12, 4  ;;  %s26_s15 = sshll.u32 %s312_s14, 4  ;;  %s18_s13 = int_to_ptr.vmem [resolvable:$true] %s17_s13  ;;  %s339_s15 = int_to_ptr.vmem [resolvable:$true] %s26_s15 }
   0x4   :  { %s239_s18 = scalar_lea.hbm %s385_s0, 128 }
   0x5   :  { %p240_p0 = scmp.ne.s32.totalorder %s385_s0, %s239_s18  ;;  %p243_p1 = scmp.lt.u32.totalorder %s239_s18, %s385_s0 }
   0x7   :  { %p245_p2 = pnand %p243_p1, %p240_p0 }
   0x9   :  { %248 = shalt.err (!%p245_p2)
}
   0xa   :  { %s249_s23 = scalar_lea.vmem %s18_s13, 128  ;;  %p254_p4 = scmp.lt.s32.totalorder %s18_s13, %s18_s13 }
   0xb   :  { %p250_p3 = scmp.ne.s32.totalorder %s18_s13, %s249_s23  ;;  %p255_p5 = scmp.lt.s32.totalorder %s249_s23, %s249_s23 }
   0xd   :  { %p256_p6 = por %p255_p5, %p254_p4 }
   0xf   :  { %p257_p7 = pnand %p256_p6, %p250_p3 }
  0x11   :  { %260 = shalt.err (!%p257_p7)
}
  0x12   :  { %20 = dma.hbm_to_vmem [thread:$0]  %s385_s0, 128, %s18_s13, [#allocation3]  }
  0x13   :  { %s261_s28 = scalar_lea.hbm %s386_s1, 2048 }
  0x14   :  { %p262_p8 = scmp.ne.s32.totalorder %s386_s1, %s261_s28  ;;  %p265_p9 = scmp.lt.u32.totalorder %s261_s28, %s386_s1 }
  0x16   :  { %p267_p10 = pnand %p265_p9, %p262_p8 }
  0x18   :  { %270 = shalt.err (!%p267_p10)
}
  0x19   :  { %s271_s6 = scalar_lea.vmem %s339_s15, 2048  ;;  %p276_p12 = scmp.lt.s32.totalorder %s339_s15, %s339_s15 }
  0x1a   :  { %p272_p11 = scmp.ne.s32.totalorder %s339_s15, %s271_s6  ;;  %p277_p13 = scmp.lt.s32.totalorder %s271_s6, %s271_s6 }
  0x1c   :  { %p278_p0 = por %p277_p13, %p276_p12 }
  0x1e   :  { %p279_p1 = pnand %p278_p0, %p272_p11 }
  0x20   :  { %282 = shalt.err (!%p279_p1)
}
  0x21   :  { %s313_s0 = smov 128   ;;  %s314_s7 = smov 8  }
  0x22   :  { %32 = dma.hbm_to_vmem [thread:$0]  %s386_s1, 2048, %s339_s15, [#allocation6], %s313_s0, %s313_s0, %s314_s7  }
  0x23   :  { %305 = dma.done.wait [#allocation3], 128  }
  0x24   :  { %306 = vsyncadd [#allocation3], 4294967168 }
  0x25   :  { %307 = dma.done.wait [#allocation6], 2048  }
  0x26   :  { %308 = vsyncadd [#allocation6], 4294965248  ;;  %v315_v0 = vmov 0.0|0.0   ;;  %vm316_vm0 = vmmov 0   ;;  %v317_v1 = vmov 0.0   ;;  %v42_v2 = vld [vmem:[#allocation5] sm:$0xff] }
  0x27   :  { %207 = vmatprep.subr.bf16.mxu0 %v315_v0  ;;  %204 = vmatprep.mubr.msk.f32.mxu0 %vm316_vm0, %v317_v1  ;;  %v43_v3 = vld [vmem:[#allocation5 + $0x8] sm:$0xff]  ;;  %v44_v5 = vld [vmem:[#allocation5 + $0x10] sm:$0xff]  ;;  %v45_v6 = vld [vmem:[#allocation5 + $0x18] sm:$0xff]  ;;  %s318_s11 = smov [#allocation7]  }
  0x28   :  { %v208_v4 = vpack.c.bf16 %v43_v3, %v42_v2  ;;  %v211_v7 = vpack.c.bf16 %v45_v6, %v44_v5  ;;  %v46_v8 = vld [vmem:[#allocation5 + $0x20] sm:$0xff]  ;;  %v47_v9 = vld [vmem:[#allocation5 + $0x28] sm:$0xff]  ;;  %v48_v11 = vld [vmem:[#allocation5 + $0x30] sm:$0xff]  ;;  %s144_s12 = sshll.u32 %s318_s11, 4  ;;  %s145_s12 = int_to_ptr.vmem [resolvable:$true] %s144_s12 }
  0x29   :  { %v214_v10 = vpack.c.bf16 %v47_v9, %v46_v8  ;;  %v49_v12 = vld [vmem:[#allocation5 + $0x38] sm:$0xff]  ;;  %v50_v14 = vld [vmem:[#allocation5 + $0x40] sm:$0xff]  ;;  %v51_v15 = vld [vmem:[#allocation5 + $0x48] sm:$0xff]  ;;  %s283_s13 = scalar_lea.vmem %s145_s12, 128  ;;  %p288_p3 = scmp.lt.s32.totalorder %s145_s12, %s145_s12 }
  0x2a   :  { %209 = vmatpush3.bf16.xpose.msra.mxu0 %v208_v4  ;;  %v217_v13 = vpack.c.bf16 %v49_v12, %v48_v11  ;;  %v220_v16 = vpack.c.bf16 %v51_v15, %v50_v14  ;;  %v52_v17 = vld [vmem:[#allocation5 + $0x50] sm:$0xff]  ;;  %v53_v18 = vld [vmem:[#allocation5 + $0x58] sm:$0xff]  ;;  %v54_v20 = vld [vmem:[#allocation5 + $0x60] sm:$0xff]  ;;  %p284_p2 = scmp.ne.s32.totalorder %s145_s12, %s283_s13  ;;  %p289_p4 = scmp.lt.s32.totalorder %s283_s13, %s283_s13 }
  0x2b   :  { %210 = vmatprep.subr.bf16.mxu0 %v315_v0  ;;  %v223_v19 = vpack.c.bf16 %v53_v18, %v52_v17  ;;  %v55_v21 = vld [vmem:[#allocation5 + $0x68] sm:$0xff]  ;;  %v56_v23 = vld [vmem:[#allocation5 + $0x70] sm:$0xff]  ;;  %v57_v24 = vld [vmem:[#allocation5 + $0x78] sm:$0xff] }
  0x2c   :  { %v226_v22 = vpack.c.bf16 %v55_v21, %v54_v20  ;;  %v229_v25 = vpack.c.bf16 %v57_v24, %v56_v23  ;;  %v41_v26 = vld [vmem:[#allocation2] sm:$0xff]  ;;  %p290_p5 = por %p289_p4, %p288_p3 }
  0x2d   :  { %v154_v28 = vld [vmem:[%s387_s2] ss:$0 sm:$0xff] }
  0x2e   :  { %p291_p6 = pnand %p290_p5, %p284_p2 }
  0x32   :  { %212 = vmatpush3.bf16.xpose.msra.mxu0 %v211_v7 }
  0x33   :  { %213 = vmatprep.subr.bf16.mxu0 %v315_v0 }
  0x3a   :  { %215 = vmatpush3.bf16.xpose.msra.mxu0 %v214_v10 }
  0x3b   :  { %216 = vmatprep.subr.bf16.mxu0 %v315_v0 }
  0x42   :  { %218 = vmatpush3.bf16.xpose.msra.mxu0 %v217_v13 }
  0x43   :  { %219 = vmatprep.subr.bf16.mxu0 %v315_v0 }
  0x4a   :  { %221 = vmatpush3.bf16.xpose.msra.mxu0 %v220_v16 }
  0x4b   :  { %222 = vmatprep.subr.bf16.mxu0 %v315_v0 }
  0x52   :  { %224 = vmatpush3.bf16.xpose.msra.mxu0 %v223_v19 }
  0x53   :  { %225 = vmatprep.subr.bf16.mxu0 %v315_v0 }
  0x5a   :  { %227 = vmatpush3.bf16.xpose.msra.mxu0 %v226_v22 }
  0x5b   :  { %228 = vmatprep.subr.bf16.mxu0 %v315_v0 }
  0x62   :  { %230 = vmatpush3.bf16.xpose.msra.mxu0 %v229_v25 }
  0x69   :  { %205 = vmatmul.mubr.f32.vlgmr.msra.gmra.mrb[0].mxu0 %v41_v26 }
 0x13c   :  { %v124_v27 = vpop.f32.mrb[0].mxu0 }
 0x13d   :  { %v128_v29 = vmul.f32 0.17677669, %v124_v27  ;;  %v206_v30 = vpop.f32.mrb[1].mxu0 }
 0x13f   :  { %v136_v31 = vadd.f32 %v154_v28, %v128_v29 }
 0x141   :  { %137 = vst [vmem:[#allocation7] sm:$0xff] %v136_v31 }
 0x142   :  { %294 = shalt.err (!%p291_p6)
}
 0x143   :  { %s295_s16 = scalar_lea.hbm %s388_s3, 128 }
 0x144   :  { %p296_p7 = scmp.ne.s32.totalorder %s388_s3, %s295_s16  ;;  %p299_p8 = scmp.lt.u32.totalorder %s295_s16, %s388_s3 }
 0x146   :  { %p301_p9 = pnand %p299_p8, %p296_p7 }
 0x148   :  { %304 = shalt.err (!%p301_p9)
}
 0x149   :  { %147 = dma.vmem_to_hbm [thread:$0]  %s145_s12, 128, %s388_s3, [#allocation4]  }
 0x14a   :  { %309 = dma.done.wait [#allocation4], 128  }
 0x14b   :  { %310 = vsyncadd [#allocation4], 4294967168 }
 0x14c   :  { %151 = vsyncpa [#allocation3], 1 }
 0x14d   :  { %152 = vsyncpa [#allocation6], 1 }
 0x14e   :  { %153 = vsyncpa [#allocation4], 1 }

</bundles_post_ra>
